<compile_context>
chip_gen: v5e
topology: v5e:2x2
jax: 0.10.0
libtpu: 0.0.40
codegen_flags: <defaults>
</compile_context>

<pallas_src>
import functools

import jax
import jax.numpy as jnp
from jax.experimental import pallas as pl
from jax.experimental.pallas import tpu as pltpu

EPS = 1e-5          # nn.LayerNorm default eps
H1, H2 = 128, 64    # hidden widths fixed by the module
LANE = 128          # lane width (output padded to a multiple of this)
SUBLANE = 16        # bf16 sublane packing granularity


def _round_up(x, m):
    return (x + m - 1) // m * m


def _layernorm(x, gamma, beta, inv_d):
    # One-pass biased mean/variance (matches torch.nn.LayerNorm): one pair of
    # cross-lane reductions instead of two passes over x.
    s = jnp.sum(x, axis=-1, keepdims=True)
    s2 = jnp.sum(x * x, axis=-1, keepdims=True)
    mean = s * inv_d
    var = s2 * inv_d - mean * mean
    inv = jax.lax.rsqrt(var + EPS)
    return (x - mean) * inv * gamma + beta


def latent_predictor_kernel(
    x_ref,
    w1_ref, b1_ref, g1_ref, be1_ref,
    w2_ref, b2_ref, g2_ref, be2_ref,
    w3_ref, b3_ref,
    o_ref,
):
    # Hoist parameter loads once per grid step (params are VMEM-resident).
    w1 = w1_ref[...]
    b1 = b1_ref[...]
    g1 = g1_ref[...]
    be1 = be1_ref[...]
    w2 = w2_ref[...]
    b2 = b2_ref[...]
    g2 = g2_ref[...]
    be2 = be2_ref[...]
    w3 = w3_ref[...]
    b3 = b3_ref[...]

    x = x_ref[...]  # bf16 (block_m, input_dim)

    # fc1 -> LayerNorm(128) -> ReLU   (bf16 MXU inputs, f32 accumulate / LN)
    h1 = jnp.dot(x, w1, preferred_element_type=jnp.float32) + b1
    h1 = jnp.maximum(_layernorm(h1, g1, be1, 1.0 / H1), 0.0)

    # fc2 -> LayerNorm(64) -> ReLU
    h2 = jnp.dot(h1.astype(w2.dtype), w2, preferred_element_type=jnp.float32) + b2
    h2 = jnp.maximum(_layernorm(h2, g2, be2, 1.0 / H2), 0.0)

    # fc3 (output columns lane-padded to a multiple of 128 -> unmasked stores)
    out = jnp.dot(h2.astype(w3.dtype), w3, preferred_element_type=jnp.float32) + b3
    o_ref[...] = out.astype(o_ref.dtype)


def latent_predictor(x, params, *, block_m=None, compute_dtype=jnp.bfloat16):
    """x: (B, input_dim). params: dict from init_params. Returns (B, latent_dim) f32."""
    B, input_dim = x.shape
    latent_dim = params["w3"].shape[1]
    n_out = _round_up(latent_dim, LANE)  # lane-dense padded output width

    # --- derive batch tile ---------------------------------------------------
    # Budget ~12 MiB for per-row streams (double-buffered x tile + f32
    # activations + double-buffered output tile): stays well under the default
    # scoped VMEM limit on every generation, including v7x (32 MiB scoped).
    if block_m is None:
        in_bytes = jnp.dtype(compute_dtype).itemsize
        per_row = 2 * input_dim * in_bytes + 4 * (H1 + H2 + 2 * n_out)
        rows = max(SUBLANE, (12 << 20) // per_row)
        if rows >= 256:
            # Cap at 512: still amortizes grid-step overhead / fills MXU rows,
            # and batches >=1024 get >=2 grid steps for v7x megacore sharding.
            block_m = min(512, rows // 256 * 256)
        else:
            block_m = rows // SUBLANE * SUBLANE
    block_m = _round_up(min(block_m, _round_up(B, SUBLANE)), SUBLANE)

    padded_B = _round_up(B, block_m)
    grid = (padded_B // block_m,)

    # --- prepare operands ----------------------------------------------------
    xc = x.astype(compute_dtype)
    if padded_B != B:
        xc = jnp.pad(xc, ((0, padded_B - B), (0, 0)))

    w1 = params["w1"].astype(compute_dtype)
    w2 = params["w2"].astype(compute_dtype)
    w3 = params["w3"].astype(compute_dtype)
    b1 = params["b1"].astype(jnp.float32)
    b2 = params["b2"].astype(jnp.float32)
    b3 = params["b3"].astype(jnp.float32)
    g1, be1 = params["g1"].astype(jnp.float32), params["be1"].astype(jnp.float32)
    g2, be2 = params["g2"].astype(jnp.float32), params["be2"].astype(jnp.float32)
    if n_out != latent_dim:
        # Zero-padded output columns -> lane-dense stores; sliced off afterwards.
        w3 = jnp.pad(w3, ((0, 0), (0, n_out - latent_dim)))
        b3 = jnp.pad(b3, ((0, 0), (0, n_out - latent_dim)))

    def full_spec(arr):
        return pl.BlockSpec(arr.shape, lambda i: (0, 0))

    in_specs = [
        pl.BlockSpec((block_m, input_dim), lambda i: (i, 0)),  # x tile
        full_spec(w1), full_spec(b1), full_spec(g1), full_spec(be1),
        full_spec(w2), full_spec(b2), full_spec(g2), full_spec(be2),
        full_spec(w3), full_spec(b3),
    ]
    out_spec = pl.BlockSpec((block_m, n_out), lambda i: (i, 0))

    flops = 2 * padded_B * (input_dim * H1 + H1 * H2 + H2 * n_out)
    bytes_accessed = int(
        xc.size * jnp.dtype(compute_dtype).itemsize
        + padded_B * n_out * 4
        + (w1.size + w2.size + w3.size) * jnp.dtype(compute_dtype).itemsize
        + (b1.size + g1.size + be1.size + b2.size + g2.size + be2.size + b3.size) * 4
    )
    cost = pl.CostEstimate(
        flops=flops,
        transcendentals=2 * padded_B,  # one rsqrt per row per LayerNorm
        bytes_accessed=bytes_accessed,
    )

    out = pl.pallas_call(
        latent_predictor_kernel,
        out_shape=jax.ShapeDtypeStruct((padded_B, n_out), jnp.float32),
        grid_spec=pltpu.PrefetchScalarGridSpec(
            num_scalar_prefetch=0,
            grid=grid,
            in_specs=in_specs,
            out_specs=out_spec,
        ),
        compiler_params=pltpu.CompilerParams(
            dimension_semantics=("parallel",),
        ),
        cost_estimate=cost,
    )(xc, w1, b1, g1, be1, w2, b2, g2, be2, w3, b3)

    return out[:B, :latent_dim]


def init_params(key, input_dim, latent_dim):
    """Deterministic synthetic parameters matching nn.Linear/LayerNorm init.
    Linear weights are stored transposed relative to PyTorch: (in, out)."""
    k = jax.random.split(key, 6)

    def linear(kw, kb, fan_in, fan_out):
        bound = 1.0 / jnp.sqrt(fan_in)
        w = jax.random.uniform(kw, (fan_in, fan_out), jnp.float32, -bound, bound)
        b = jax.random.uniform(kb, (1, fan_out), jnp.float32, -bound, bound)
        return w, b

    w1, b1 = linear(k[0], k[1], input_dim, H1)
    w2, b2 = linear(k[2], k[3], H1, H2)
    w3, b3 = linear(k[4], k[5], H2, latent_dim)
    return {
        "w1": w1, "b1": b1, "g1": jnp.ones((1, H1), jnp.float32), "be1": jnp.zeros((1, H1), jnp.float32),
        "w2": w2, "b2": b2, "g2": jnp.ones((1, H2), jnp.float32), "be2": jnp.zeros((1, H2), jnp.float32),
        "w3": w3, "b3": b3,
    }


def latent_predictor_ref(x, p, compute_dtype=None):
    """Pure-JAX reference. If compute_dtype is given, mirrors the kernel's
    bf16 matmul inputs (f32 accumulate); otherwise full f32."""
    def ln(h, g, b):
        m = jnp.mean(h, -1, keepdims=True)
        v = jnp.mean((h - m) ** 2, -1, keepdims=True)
        return (h - m) * jax.lax.rsqrt(v + EPS) * g + b

    def mm(a, w):
        if compute_dtype is not None:
            a = a.astype(compute_dtype)
            w = w.astype(compute_dtype)
        return jnp.dot(a, w, preferred_element_type=jnp.float32)

    h = jnp.maximum(ln(mm(x, p["w1"]) + p["b1"], p["g1"], p["be1"]), 0.0)
    h = jnp.maximum(ln(mm(h, p["w2"]) + p["b2"], p["g2"], p["be2"]), 0.0)
    return mm(h, p["w3"]) + p["b3"]


if __name__ == "__main__":
    input_dim, latent_dim, batch = 32, 16, 8

    key = jax.random.PRNGKey(0)
    kx, kp = jax.random.split(key)
    x = jax.random.normal(kx, (batch, input_dim), jnp.float32)
    params = init_params(kp, input_dim, latent_dim)

    predict = jax.jit(functools.partial(latent_predictor))
    out = jax.block_until_ready(predict(x, params))
    assert out.shape == (batch, latent_dim)

    # Tight check against a reference with identical bf16 matmul inputs.
    ref_bf16 = latent_predictor_ref(x, params, compute_dtype=jnp.bfloat16)
    assert jnp.allclose(out, ref_bf16, atol=1e-3, rtol=1e-3)
    # Loose semantics check against the full-f32 reference.
    ref_f32 = latent_predictor_ref(x, params)
    assert float(jnp.max(jnp.abs(out - ref_f32))) < 0.1

    # Exercise the batch-padding / output-slicing path (non-multiple batch).
    x2 = jax.random.normal(jax.random.PRNGKey(1), (50, input_dim), jnp.float32)
    out2 = jax.block_until_ready(predict(x2, params))
    ref2 = latent_predictor_ref(x2, params, compute_dtype=jnp.bfloat16)
    assert out2.shape == (50, latent_dim)
    assert jnp.allclose(out2, ref2, atol=1e-3, rtol=1e-3)

    print("KERNEL_OK")
</pallas_src>

<mosaic_0001>
module attributes {stable_mosaic.version = 11 : i64} {
  func.func @latent_predictor_kernel(%arg0: i32, %arg1: memref<16x32xbf16, #tpu.memory_space<vmem>>, %arg2: memref<32x128xbf16, #tpu.memory_space<vmem>>, %arg3: memref<1x128xf32, #tpu.memory_space<vmem>>, %arg4: memref<1x128xf32, #tpu.memory_space<vmem>>, %arg5: memref<1x128xf32, #tpu.memory_space<vmem>>, %arg6: memref<128x64xbf16, #tpu.memory_space<vmem>>, %arg7: memref<1x64xf32, #tpu.memory_space<vmem>>, %arg8: memref<1x64xf32, #tpu.memory_space<vmem>>, %arg9: memref<1x64xf32, #tpu.memory_space<vmem>>, %arg10: memref<64x128xbf16, #tpu.memory_space<vmem>>, %arg11: memref<1x128xf32, #tpu.memory_space<vmem>>, %arg12: memref<16x128xf32, #tpu.memory_space<vmem>>) attributes {dimension_semantics = [#tpu.dimension_semantics<parallel>], iteration_bounds = array<i64: 1>, scalar_prefetch = 0 : i64, scratch_operands = 0 : i64, tpu.core_type = #tpu.core_type<tc>, window_params = [{transform_indices = @transform_0, window_bounds = array<i64: 16, 32>}, {pipeline_mode = #tpu.pipeline_mode<synchronous>, transform_indices = @transform_1, window_bounds = array<i64: 32, 128>}, {pipeline_mode = #tpu.pipeline_mode<synchronous>, transform_indices = @transform_2, window_bounds = array<i64: 1, 128>}, {pipeline_mode = #tpu.pipeline_mode<synchronous>, transform_indices = @transform_3, window_bounds = array<i64: 1, 128>}, {pipeline_mode = #tpu.pipeline_mode<synchronous>, transform_indices = @transform_4, window_bounds = array<i64: 1, 128>}, {pipeline_mode = #tpu.pipeline_mode<synchronous>, transform_indices = @transform_5, window_bounds = array<i64: 128, 64>}, {pipeline_mode = #tpu.pipeline_mode<synchronous>, transform_indices = @transform_6, window_bounds = array<i64: 1, 64>}, {pipeline_mode = #tpu.pipeline_mode<synchronous>, transform_indices = @transform_7, window_bounds = array<i64: 1, 64>}, {pipeline_mode = #tpu.pipeline_mode<synchronous>, transform_indices = @transform_8, window_bounds = array<i64: 1, 64>}, {pipeline_mode = #tpu.pipeline_mode<synchronous>, transform_indices = @transform_9, window_bounds = array<i64: 64, 128>}, {pipeline_mode = #tpu.pipeline_mode<synchronous>, transform_indices = @transform_10, window_bounds = array<i64: 1, 128>}, {transform_indices = @transform_11, window_bounds = array<i64: 16, 128>}]} {
    %c0 = arith.constant 0 : index
    %c0_0 = arith.constant 0 : index
    %0 = vector.load %arg2[%c0, %c0_0] : memref<32x128xbf16, #tpu.memory_space<vmem>>, vector<32x128xbf16>
    %c0_1 = arith.constant 0 : index
    %c0_2 = arith.constant 0 : index
    %1 = vector.load %arg3[%c0_1, %c0_2] : memref<1x128xf32, #tpu.memory_space<vmem>>, vector<1x128xf32>
    %c0_3 = arith.constant 0 : index
    %c0_4 = arith.constant 0 : index
    %2 = vector.load %arg4[%c0_3, %c0_4] : memref<1x128xf32, #tpu.memory_space<vmem>>, vector<1x128xf32>
    %c0_5 = arith.constant 0 : index
    %c0_6 = arith.constant 0 : index
    %3 = vector.load %arg5[%c0_5, %c0_6] : memref<1x128xf32, #tpu.memory_space<vmem>>, vector<1x128xf32>
    %c0_7 = arith.constant 0 : index
    %c0_8 = arith.constant 0 : index
    %4 = vector.load %arg6[%c0_7, %c0_8] : memref<128x64xbf16, #tpu.memory_space<vmem>>, vector<128x64xbf16>
    %c0_9 = arith.constant 0 : index
    %c0_10 = arith.constant 0 : index
    %5 = vector.load %arg7[%c0_9, %c0_10] : memref<1x64xf32, #tpu.memory_space<vmem>>, vector<1x64xf32>
    %c0_11 = arith.constant 0 : index
    %c0_12 = arith.constant 0 : index
    %6 = vector.load %arg8[%c0_11, %c0_12] : memref<1x64xf32, #tpu.memory_space<vmem>>, vector<1x64xf32>
    %c0_13 = arith.constant 0 : index
    %c0_14 = arith.constant 0 : index
    %7 = vector.load %arg9[%c0_13, %c0_14] : memref<1x64xf32, #tpu.memory_space<vmem>>, vector<1x64xf32>
    %c0_15 = arith.constant 0 : index
    %c0_16 = arith.constant 0 : index
    %8 = vector.load %arg10[%c0_15, %c0_16] : memref<64x128xbf16, #tpu.memory_space<vmem>>, vector<64x128xbf16>
    %c0_17 = arith.constant 0 : index
    %c0_18 = arith.constant 0 : index
    %9 = vector.load %arg11[%c0_17, %c0_18] : memref<1x128xf32, #tpu.memory_space<vmem>>, vector<1x128xf32>
    %c0_19 = arith.constant 0 : index
    %c0_20 = arith.constant 0 : index
    %10 = vector.load %arg1[%c0_19, %c0_20] : memref<16x32xbf16, #tpu.memory_space<vmem>>, vector<16x32xbf16>
    %cst = arith.constant dense<0.000000e+00> : vector<16x128xf32>
    %11 = tpu.matmul %10, %0, %cst {dimension_numbers = #tpu.dot_dimension_numbers<[1], [0], [0], [1], [0, 0, 1, 1], [], []>} : vector<16x32xbf16>, vector<32x128xbf16>, vector<16x128xf32> -> vector<16x128xf32>
    %12 = vector.broadcast %1 : vector<1x128xf32> to vector<16x128xf32>
    %13 = arith.addf %11, %12 : vector<16x128xf32>
    %cst_21 = arith.constant dense<0.000000e+00> : vector<16xf32>
    %14 = vector.multi_reduction <add>, %13, %cst_21 [1] : vector<16x128xf32> to vector<16xf32>
    %15 = vector.shape_cast %14 : vector<16xf32> to vector<16x1xf32>
    %16 = arith.mulf %13, %13 : vector<16x128xf32>
    %cst_22 = arith.constant dense<0.000000e+00> : vector<16xf32>
    %17 = vector.multi_reduction <add>, %16, %cst_22 [1] : vector<16x128xf32> to vector<16xf32>
    %18 = vector.shape_cast %17 : vector<16xf32> to vector<16x1xf32>
    %cst_23 = arith.constant 7.812500e-03 : f32
    %19 = vector.broadcast %cst_23 : f32 to vector<16x1xf32>
    %20 = arith.mulf %15, %19 : vector<16x1xf32>
    %cst_24 = arith.constant 7.812500e-03 : f32
    %21 = vector.broadcast %cst_24 : f32 to vector<16x1xf32>
    %22 = arith.mulf %18, %21 : vector<16x1xf32>
    %23 = arith.mulf %20, %20 : vector<16x1xf32>
    %24 = arith.subf %22, %23 : vector<16x1xf32>
    %cst_25 = arith.constant 9.99999974E-6 : f32
    %25 = vector.broadcast %cst_25 : f32 to vector<16x1xf32>
    %26 = arith.addf %24, %25 : vector<16x1xf32>
    %27 = math.rsqrt %26 : vector<16x1xf32>
    %28 = vector.broadcast %20 : vector<16x1xf32> to vector<16x128xf32>
    %29 = arith.subf %13, %28 : vector<16x128xf32>
    %30 = vector.broadcast %27 : vector<16x1xf32> to vector<16x128xf32>
    %31 = arith.mulf %29, %30 : vector<16x128xf32>
    %32 = vector.broadcast %2 : vector<1x128xf32> to vector<16x128xf32>
    %33 = arith.mulf %31, %32 : vector<16x128xf32>
    %34 = vector.broadcast %3 : vector<1x128xf32> to vector<16x128xf32>
    %35 = arith.addf %33, %34 : vector<16x128xf32>
    %cst_26 = arith.constant 0.000000e+00 : f32
    %36 = vector.broadcast %cst_26 : f32 to vector<16x128xf32>
    %37 = arith.maximumf %35, %36 : vector<16x128xf32>
    %38 = arith.truncf %37 : vector<16x128xf32> to vector<16x128xbf16>
    %cst_27 = arith.constant dense<0.000000e+00> : vector<16x64xf32>
    %39 = tpu.matmul %38, %4, %cst_27 {dimension_numbers = #tpu.dot_dimension_numbers<[1], [0], [0], [1], [0, 0, 1, 1], [], []>} : vector<16x128xbf16>, vector<128x64xbf16>, vector<16x64xf32> -> vector<16x64xf32>
    %40 = vector.broadcast %5 : vector<1x64xf32> to vector<16x64xf32>
    %41 = arith.addf %39, %40 : vector<16x64xf32>
    %cst_28 = arith.constant dense<0.000000e+00> : vector<16xf32>
    %42 = vector.multi_reduction <add>, %41, %cst_28 [1] : vector<16x64xf32> to vector<16xf32>
    %43 = vector.shape_cast %42 : vector<16xf32> to vector<16x1xf32>
    %44 = arith.mulf %41, %41 : vector<16x64xf32>
    %cst_29 = arith.constant dense<0.000000e+00> : vector<16xf32>
    %45 = vector.multi_reduction <add>, %44, %cst_29 [1] : vector<16x64xf32> to vector<16xf32>
    %46 = vector.shape_cast %45 : vector<16xf32> to vector<16x1xf32>
    %cst_30 = arith.constant 1.562500e-02 : f32
    %47 = vector.broadcast %cst_30 : f32 to vector<16x1xf32>
    %48 = arith.mulf %43, %47 : vector<16x1xf32>
    %cst_31 = arith.constant 1.562500e-02 : f32
    %49 = vector.broadcast %cst_31 : f32 to vector<16x1xf32>
    %50 = arith.mulf %46, %49 : vector<16x1xf32>
    %51 = arith.mulf %48, %48 : vector<16x1xf32>
    %52 = arith.subf %50, %51 : vector<16x1xf32>
    %cst_32 = arith.constant 9.99999974E-6 : f32
    %53 = vector.broadcast %cst_32 : f32 to vector<16x1xf32>
    %54 = arith.addf %52, %53 : vector<16x1xf32>
    %55 = math.rsqrt %54 : vector<16x1xf32>
    %56 = vector.broadcast %48 : vector<16x1xf32> to vector<16x64xf32>
    %57 = arith.subf %41, %56 : vector<16x64xf32>
    %58 = vector.broadcast %55 : vector<16x1xf32> to vector<16x64xf32>
    %59 = arith.mulf %57, %58 : vector<16x64xf32>
    %60 = vector.broadcast %6 : vector<1x64xf32> to vector<16x64xf32>
    %61 = arith.mulf %59, %60 : vector<16x64xf32>
    %62 = vector.broadcast %7 : vector<1x64xf32> to vector<16x64xf32>
    %63 = arith.addf %61, %62 : vector<16x64xf32>
    %cst_33 = arith.constant 0.000000e+00 : f32
    %64 = vector.broadcast %cst_33 : f32 to vector<16x64xf32>
    %65 = arith.maximumf %63, %64 : vector<16x64xf32>
    %66 = arith.truncf %65 : vector<16x64xf32> to vector<16x64xbf16>
    %cst_34 = arith.constant dense<0.000000e+00> : vector<16x128xf32>
    %67 = tpu.matmul %66, %8, %cst_34 {dimension_numbers = #tpu.dot_dimension_numbers<[1], [0], [0], [1], [0, 0, 1, 1], [], []>} : vector<16x64xbf16>, vector<64x128xbf16>, vector<16x128xf32> -> vector<16x128xf32>
    %68 = vector.broadcast %9 : vector<1x128xf32> to vector<16x128xf32>
    %69 = arith.addf %67, %68 : vector<16x128xf32>
    %c0_35 = arith.constant 0 : index
    %c0_36 = arith.constant 0 : index
    %70 = vector.load %arg12[%c0_35, %c0_36] : memref<16x128xf32, #tpu.memory_space<vmem>>, vector<16x128xf32>
    tpu.vector_store %arg12[%c0_35, %c0_36], %69 {strides = array<i32>} : memref<16x128xf32, #tpu.memory_space<vmem>>, vector<16x128xf32>,
    return
  }
  func.func @transform_0(%arg0: i32) -> (i32, i32) {
    %c0_i32 = arith.constant 0 : i32
    %c0_i32_0 = arith.constant 0 : i32
    return %arg0, %c0_i32 : i32, i32
  }
  func.func @transform_1(%arg0: i32) -> (i32, i32) {
    %c0_i32 = arith.constant 0 : i32
    %c0_i32_0 = arith.constant 0 : i32
    %c0_i32_1 = arith.constant 0 : i32
    return %c0_i32, %c0_i32_0 : i32, i32
  }
  func.func @transform_2(%arg0: i32) -> (i32, i32) {
    %c0_i32 = arith.constant 0 : i32
    %c0_i32_0 = arith.constant 0 : i32
    %c0_i32_1 = arith.constant 0 : i32
    return %c0_i32, %c0_i32_0 : i32, i32
  }
  func.func @transform_3(%arg0: i32) -> (i32, i32) {
    %c0_i32 = arith.constant 0 : i32
    %c0_i32_0 = arith.constant 0 : i32
    %c0_i32_1 = arith.constant 0 : i32
    return %c0_i32, %c0_i32_0 : i32, i32
  }
  func.func @transform_4(%arg0: i32) -> (i32, i32) {
    %c0_i32 = arith.constant 0 : i32
    %c0_i32_0 = arith.constant 0 : i32
    %c0_i32_1 = arith.constant 0 : i32
    return %c0_i32, %c0_i32_0 : i32, i32
  }
  func.func @transform_5(%arg0: i32) -> (i32, i32) {
    %c0_i32 = arith.constant 0 : i32
    %c0_i32_0 = arith.constant 0 : i32
    %c0_i32_1 = arith.constant 0 : i32
    return %c0_i32, %c0_i32_0 : i32, i32
  }
  func.func @transform_6(%arg0: i32) -> (i32, i32) {
    %c0_i32 = arith.constant 0 : i32
    %c0_i32_0 = arith.constant 0 : i32
    %c0_i32_1 = arith.constant 0 : i32
    return %c0_i32, %c0_i32_0 : i32, i32
  }
  func.func @transform_7(%arg0: i32) -> (i32, i32) {
    %c0_i32 = arith.constant 0 : i32
    %c0_i32_0 = arith.constant 0 : i32
    %c0_i32_1 = arith.constant 0 : i32
    return %c0_i32, %c0_i32_0 : i32, i32
  }
  func.func @transform_8(%arg0: i32) -> (i32, i32) {
    %c0_i32 = arith.constant 0 : i32
    %c0_i32_0 = arith.constant 0 : i32
    %c0_i32_1 = arith.constant 0 : i32
    return %c0_i32, %c0_i32_0 : i32, i32
  }
  func.func @transform_9(%arg0: i32) -> (i32, i32) {
    %c0_i32 = arith.constant 0 : i32
    %c0_i32_0 = arith.constant 0 : i32
    %c0_i32_1 = arith.constant 0 : i32
    return %c0_i32, %c0_i32_0 : i32, i32
  }
  func.func @transform_10(%arg0: i32) -> (i32, i32) {
    %c0_i32 = arith.constant 0 : i32
    %c0_i32_0 = arith.constant 0 : i32
    %c0_i32_1 = arith.constant 0 : i32
    return %c0_i32, %c0_i32_0 : i32, i32
  }
  func.func @transform_11(%arg0: i32) -> (i32, i32) {
    %c0_i32 = arith.constant 0 : i32
    %c0_i32_0 = arith.constant 0 : i32
    return %arg0, %c0_i32 : i32, i32
  }
}

</mosaic_0001>

<bundles_post_ra>
// kernel: latent_predictor.1
= control target key start
LH: loop header
LB: loop body
LE: loop exit
PB: predicated region body
PF: predicated region fallthrough
CT: control target
= control target key end

     0   :  { %vm96_vm0 = vcmask 261120   ;;  %vm236_vm7 = vcmask 523264   ;;  %s583_s1 = inlined_call_operand.vmem [shape: bf16[32,128], index: 1, kind: input, shape index: {}]   ;;  %s584_s2 = inlined_call_operand.vmem [shape: f32[1,128], index: 2, kind: input, shape index: {}]   ;;  %s585_s0 = inlined_call_operand.vmem [shape: bf16[16,32], index: 0, kind: input, shape index: {}]   ;;  %s586_s3 = inlined_call_operand.vmem [shape: f32[1,128], index: 3, kind: input, shape index: {}]   ;;  %s587_s4 = inlined_call_operand.vmem [shape: f32[1,128], index: 4, kind: input, shape index: {}]   ;;  %s588_s6 = inlined_call_operand.vmem [shape: f32[1,64], index: 6, kind: input, shape index: {}]   ;;  %s589_s5 = inlined_call_operand.vmem [shape: bf16[128,64], index: 5, kind: input, shape index: {}]   ;;  %s590_s7 = inlined_call_operand.vmem [shape: f32[1,64], index: 7, kind: input, shape index: {}]   ;;  %s591_s8 = inlined_call_operand.vmem [shape: f32[1,64], index: 8, kind: input, shape index: {}]   ;;  %s592_s10 = inlined_call_operand.vmem [shape: f32[1,128], index: 10, kind: input, shape index: {}]   ;;  %s593_s9 = inlined_call_operand.vmem [shape: bf16[64,128], index: 9, kind: input, shape index: {}]   ;;  %s594_s11 = inlined_call_operand.vmem [shape: f32[16,128], index: 11, kind: output, shape index: {}]  }
   0x1   :  { %v411_v0 = vld [vmem:[%s583_s1 + $0x8] sm:$0xff]  ;;  %v410_v1 = vld [vmem:[%s583_s1] sm:$0xff]  ;;  %v419_v10 = vld [vmem:[%s589_s5 + $0x38] sm:$0xff] }
   0x2   :  { %106 = vmatpush.bf16.msra.mxu0 %v411_v0  ;;  %v424_v2 = vld [vmem:[%s585_s0] sm:$0xff]  ;;  %222 = vmatpush.bf16.msra.mxu1 %v419_v10  ;;  %v418_v11 = vld [vmem:[%s589_s5 + $0x30] sm:$0xff]  ;;  %v417_v12 = vld [vmem:[%s589_s5 + $0x28] sm:$0xff] }
   0x3   :  { %v425_v3 = vld [vmem:[%s584_s2] ss:$0 sm:$0xff]  ;;  %v415_v14 = vld [vmem:[%s589_s5 + $0x18] sm:$0xff]  ;;  %v414_v16 = vld [vmem:[%s589_s5 + $0x10] sm:$0xff] }
   0x4   :  { %v416_v13 = vld [vmem:[%s589_s5 + $0x20] sm:$0xff]  ;;  %v413_v19 = vld [vmem:[%s589_s5 + $0x8] sm:$0xff] }
   0x5   :  { %v412_v23 = vld [vmem:[%s589_s5] sm:$0xff] }
   0x6   :  { %107 = vmatpush.bf16.msra.mxu0 %v410_v1  ;;  %223 = vmatpush.bf16.msra.mxu1 %v418_v11  ;;  %v426_v45 = vld [vmem:[%s586_s3] ss:$0 sm:$0xff]  ;;  %v421_v11 = vld [vmem:[%s593_s9 + $0x8] sm:$0xff] }
   0x7   :  { %v427_v50 = vld [vmem:[%s587_s4] ss:$0 sm:$0xff] }
   0x8   :  { %v428_v59 = vld [vmem:[%s588_s6] ss:$0 sm:$0xff] }
   0x9   :  { %360 = vmatmul.msk.bf16.vlgmr.msra.gmra.mxu0 %vm96_vm0, %v424_v2 }
   0xa   :  { %224 = vmatpush.bf16.msra.mxu1 %v417_v12 }
   0xe   :  { %225 = vmatpush.bf16.msra.mxu1 %v416_v13 }
  0x12   :  { %226 = vmatpush.bf16.msra.mxu1 %v415_v14 }
  0x16   :  { %227 = vmatpush.bf16.msra.mxu1 %v414_v16 }
  0x1a   :  { %228 = vmatpush.bf16.msra.mxu1 %v413_v19 }
  0x1e   :  { %229 = vmatpush.bf16.msra.mxu1 %v412_v23 }
  0x86   :  { %v109_v4 = vpop.f32.mrf.mxu0 }
  0x87   :  { %v110_v5 = vadd.f32 %v425_v3, %v109_v4 }
  0x89   :  { %114 = vadd.xlane.f32.xlu0 %v110_v5  ;;  %v118_v6 = vmul.f32 %v110_v5, %v110_v5 }
  0x8b   :  { %120 = vadd.xlane.f32.xlu1 %v118_v6  ;;  %v423_v6 = vld [vmem:[%s593_s9 + $0x18] sm:$0xff] }
  0x8c   :  { %332 = vmatpush.bf16.msra.mxu2 %v423_v6 }
  0x8e   :  { %v111_v7 = vpop.f32.mrf.mxu0 }
  0x8f   :  { %v512_v8 = vadd.f32 %v425_v3, %v111_v7 }
  0x91   :  { %116 = vadd.xlane.f32.xlu0 %v512_v8  ;;  %v119_v9 = vmul.f32 %v512_v8, %v512_v8 }
  0x93   :  { %122 = vadd.xlane.f32.xlu1 %v119_v9 }
  0xfc   :  { %v115_v15 = vpop.xlane.xlu0 %114 }
  0xfd   :  { %v124_v17 = vmul.f32 0.0078125, %v115_v15  ;;  %v420_v15 = vld [vmem:[%s593_s9] sm:$0xff] }
  0xfe   :  { %v121_v18 = vpop.xlane.xlu1 %120 }
  0xff   :  { %v128_v20 = vmul.f32 %v124_v17, %v124_v17  ;;  %v126_v21 = vmul.f32 0.0078125, %v121_v18  ;;  %v154_v42 = vsub.f32 %v110_v5, %v124_v17 }
 0x101   :  { %v130_v22 = vsub.f32 %v126_v21, %v128_v20 }
 0x103   :  { %v132_v24 = vadd.f32 1e-05, %v130_v22 }
 0x104   :  { %v117_v25 = vpop.xlane.xlu0 %116 }
 0x105   :  { %432 = vrsqrt.f32 %v132_v24  ;;  %v125_v26 = vmul.f32 0.0078125, %v117_v25  ;;  %vm140_vm2 = vweird.f32 %v132_v24 }
 0x106   :  { %v123_v27 = vpop.xlane.xlu1 %122 }
 0x107   :  { %v129_v28 = vmul.f32 %v125_v26, %v125_v26  ;;  %v127_v29 = vmul.f32 0.0078125, %v123_v27  ;;  %v155_v48 = vsub.f32 %v512_v8, %v125_v26  ;;  %v422_v8 = vld [vmem:[%s593_s9 + $0x10] sm:$0xff] }
 0x108   :  { %333 = vmatpush.bf16.msra.mxu2 %v422_v8 }
 0x109   :  { %v131_v30 = vsub.f32 %v127_v29, %v129_v28 }
 0x10b   :  { %v433_v31 = vpop.eup %432  ;;  %v133_v32 = vadd.f32 1e-05, %v131_v30 }
 0x10c   :  { %v135_v33 = vmul.f32 %v433_v31, %v132_v24  ;;  %vm141_vm1 = vweird.f32 %v433_v31  ;;  %334 = vmatpush.bf16.msra.mxu2 %v421_v11 }
 0x10d   :  { %434 = vrsqrt.f32 %v133_v32  ;;  %vm142_vm3 = vmor %vm140_vm2, %vm141_vm1  ;;  %vm150_vm5 = vweird.f32 %v133_v32 }
 0x10e   :  { %v136_v34 = vmul.f32 %v433_v31, %v135_v33 }
 0x110   :  { %v137_v35 = vmul.f32 0.5, %v136_v34  ;;  %335 = vmatpush.bf16.msra.mxu2 %v420_v15 }
 0x112   :  { %v138_v36 = vsub.f32 1.5, %v137_v35 }
 0x113   :  { %v435_v37 = vpop.eup %434 }
 0x114   :  { %v139_v38 = vmul.f32 %v433_v31, %v138_v36  ;;  %v145_v39 = vmul.f32 %v435_v37, %v133_v32  ;;  %vm151_vm4 = vweird.f32 %v435_v37 }
 0x115   :  { %vm152_vm6 = vmor %vm150_vm5, %vm151_vm4 }
 0x116   :  { %v146_v40 = vmul.f32 %v435_v37, %v145_v39  ;;  %v143_v41 = vsel %vm142_vm3, %v433_v31, %v139_v38 }
 0x117   :  { %v156_v44 = vmul.f32 %v154_v42, %v143_v41  ;;  %v430_v42 = vld [vmem:[%s591_s8] ss:$0 sm:$0xff] }
 0x118   :  { %v147_v43 = vmul.f32 0.5, %v146_v40 }
 0x119   :  { %v161_v49 = vmul.f32 %v426_v45, %v156_v44 }
 0x11a   :  { %v148_v46 = vsub.f32 1.5, %v147_v43 }
 0x11b   :  { %v166_v54 = vadd.f32 %v427_v50, %v161_v49 }
 0x11c   :  { %v149_v47 = vmul.f32 %v435_v37, %v148_v46 }
 0x11d   :  { %v168_v56 = vmax.f32 %v166_v54, 0.0 }
 0x11e   :  { %v153_v51 = vsel %vm152_vm6, %v435_v37, %v149_v47  ;;  %v429_v37 = vld [vmem:[%s590_s7] ss:$0 sm:$0xff] }
 0x11f   :  { %v157_v52 = vmul.f32 %v155_v48, %v153_v51  ;;  %v431_v51 = vld [vmem:[%s592_s10] ss:$0 sm:$0xff] }
 0x121   :  { %v162_v53 = vmul.f32 %v426_v45, %v157_v52 }
 0x123   :  { %v167_v55 = vadd.f32 %v427_v50, %v162_v53 }
 0x125   :  { %v169_v57 = vmax.f32 %v167_v55, 0.0 }
 0x127   :  { %v170_v58 = vpack.c.bf16 %v169_v57, %v168_v56 }
 0x129   :  { %230 = vmatmul.bf16.vlgmr.msra.gmra.mxu1 %v170_v58 }
 0x1a6   :  { %v231_v60 = vpop.f32.mrf.mxu1 }
 0x1a7   :  { %v232_v61 = vadd.f32 %v428_v59, %v231_v60 }
 0x1a9   :  { %v237_v62 = vsel %vm236_vm7, %v232_v61, 0.0  ;;  %v243_v63 = vmul.f32 %v232_v61, %v232_v61 }
 0x1aa   :  { %238 = vadd.xlane.f32.xlu2 %v237_v62 }
 0x1ab   :  { %v245_v0 = vsel %vm236_vm7, %v243_v63, 0.0 }
 0x1ac   :  { %246 = vadd.xlane.f32.xlu0 %v245_v0 }
 0x1ae   :  { %v233_v1 = vpop.f32.mrf.mxu1 }
 0x1af   :  { %v234_v2 = vadd.f32 %v428_v59, %v233_v1 }
 0x1b1   :  { %v240_v3 = vsel %vm236_vm7, %v234_v2, 0.0  ;;  %v244_v4 = vmul.f32 %v234_v2, %v234_v2 }
 0x1b2   :  { %241 = vadd.xlane.f32.xlu2 %v240_v3 }
 0x1b3   :  { %v248_v5 = vsel %vm236_vm7, %v244_v4, 0.0 }
 0x1b4   :  { %249 = vadd.xlane.f32.xlu1 %v248_v5 }
 0x21d   :  { %v239_v7 = vpop.xlane.xlu2 %238 }
 0x21e   :  { %v251_v9 = vmul.f32 0.015625, %v239_v7 }
 0x21f   :  { %v247_v10 = vpop.xlane.xlu0 %246 }
 0x220   :  { %v255_v12 = vmul.f32 %v251_v9, %v251_v9  ;;  %v253_v13 = vmul.f32 0.015625, %v247_v10  ;;  %v281_v34 = vsub.f32 %v232_v61, %v251_v9 }
 0x222   :  { %v257_v14 = vsub.f32 %v253_v13, %v255_v12 }
 0x224   :  { %v259_v16 = vadd.f32 1e-05, %v257_v14 }
 0x225   :  { %v242_v17 = vpop.xlane.xlu2 %241 }
 0x226   :  { %436 = vrsqrt.f32 %v259_v16  ;;  %v252_v18 = vmul.f32 0.015625, %v242_v17  ;;  %vm267_vm9 = vweird.f32 %v259_v16 }
 0x227   :  { %v250_v19 = vpop.xlane.xlu1 %249 }
 0x228   :  { %v256_v20 = vmul.f32 %v252_v18, %v252_v18  ;;  %v254_v21 = vmul.f32 0.015625, %v250_v19  ;;  %v282_v40 = vsub.f32 %v234_v2, %v252_v18 }
 0x22a   :  { %v258_v22 = vsub.f32 %v254_v21, %v256_v20 }
 0x22c   :  { %v437_v23 = vpop.eup %436  ;;  %v260_v24 = vadd.f32 1e-05, %v258_v22 }
 0x22d   :  { %v262_v25 = vmul.f32 %v437_v23, %v259_v16  ;;  %vm268_vm8 = vweird.f32 %v437_v23 }
 0x22e   :  { %438 = vrsqrt.f32 %v260_v24  ;;  %vm269_vm10 = vmor %vm267_vm9, %vm268_vm8  ;;  %vm277_vm12 = vweird.f32 %v260_v24 }
 0x22f   :  { %v263_v26 = vmul.f32 %v437_v23, %v262_v25 }
 0x231   :  { %v264_v27 = vmul.f32 0.5, %v263_v26 }
 0x233   :  { %v265_v28 = vsub.f32 1.5, %v264_v27 }
 0x234   :  { %v439_v29 = vpop.eup %438 }
 0x235   :  { %v266_v30 = vmul.f32 %v437_v23, %v265_v28  ;;  %v272_v31 = vmul.f32 %v439_v29, %v260_v24  ;;  %vm278_vm11 = vweird.f32 %v439_v29 }
 0x236   :  { %vm279_vm13 = vmor %vm277_vm12, %vm278_vm11 }
 0x237   :  { %v270_v32 = vsel %vm269_vm10, %v437_v23, %v266_v30  ;;  %v273_v33 = vmul.f32 %v439_v29, %v272_v31 }
 0x238   :  { %v283_v36 = vmul.f32 %v281_v34, %v270_v32 }
 0x239   :  { %v274_v35 = vmul.f32 0.5, %v273_v33 }
 0x23a   :  { %v288_v41 = vmul.f32 %v429_v37, %v283_v36 }
 0x23b   :  { %v275_v38 = vsub.f32 1.5, %v274_v35 }
 0x23c   :  { %v293_v46 = vadd.f32 %v430_v42, %v288_v41 }
 0x23d   :  { %v276_v39 = vmul.f32 %v439_v29, %v275_v38 }
 0x23e   :  { %v295_v48 = vmax.f32 %v293_v46, 0.0 }
 0x23f   :  { %v280_v43 = vsel %vm279_vm13, %v439_v29, %v276_v39 }
 0x240   :  { %v284_v44 = vmul.f32 %v282_v40, %v280_v43 }
 0x242   :  { %v289_v45 = vmul.f32 %v429_v37, %v284_v44 }
 0x244   :  { %v294_v47 = vadd.f32 %v430_v42, %v289_v45 }
 0x246   :  { %v296_v49 = vmax.f32 %v294_v47, 0.0 }
 0x248   :  { %v297_v50 = vpack.c.bf16 %v296_v49, %v295_v48 }
 0x24a   :  { %409 = vmatmul.msk.bf16.vlgmr.msra.gmra.mxu2 %vm236_vm7, %v297_v50 }
 0x2cd   :  { %v337_v52 = vpop.f32.mrf.mxu2 }
 0x2ce   :  { %v338_v53 = vadd.f32 %v431_v51, %v337_v52 }
 0x2d0   :  { %342 = vst [vmem:[%s594_s11] sm:$0xff] %v338_v53 }
 0x2d5   :  { %v339_v54 = vpop.f32.mrf.mxu2 }
 0x2d6   :  { %v340_v55 = vadd.f32 %v431_v51, %v339_v54 }
 0x2d8   :  { %343 = vst [vmem:[%s594_s11 + $0x8] sm:$0xff] %v340_v55 }

</bundles_post_ra>
